<compile_context>
chip_gen: v7x
topology: tpu7x:2x2x1
jax: 0.10.0
libtpu: 0.0.40
codegen_flags: <defaults>
</compile_context>

<pallas_src>
import functools

import jax
import jax.numpy as jnp
from jax.experimental import pallas as pl
from jax.experimental.pallas import tpu as pltpu


_LANE = 128            # lane width: last-dim padding granularity
_SUBLANE_BF16 = 16     # bf16 packs 16 sublanes per vreg -> round M up to 16
_TM_CAP = 512
_TN_CAP = 512
_TK_CAP = 512
_FUSED_VMEM_BUDGET = 20 * 1024 * 1024   # safe on v5e/v6e/v7x scoped VMEM
_VMEM_LIMIT = 32 * 1024 * 1024


def _round_up(x, m):
    return (x + m - 1) // m * m


def _pick_tile(dim, cap):
    """Largest multiple of 128 that divides `dim` (itself a multiple of 128), <= cap."""
    t = max(_LANE, min(cap, dim))
    t -= t % _LANE
    while dim % t:
        t -= _LANE
    return t


# --------------------------- fused whole-MLP kernel ---------------------------

def _fused_mlp_kernel(*refs, n_layers):
    """refs = (x_ref, w0, b0, w1, b1, ..., o_ref); everything resident in VMEM."""
    x_ref, o_ref = refs[0], refs[-1]
    h = x_ref[...]                                     # bf16 activations
    for l in range(n_layers):
        w_ref = refs[1 + 2 * l]
        b_ref = refs[2 + 2 * l]
        y = jnp.dot(h, w_ref[...], preferred_element_type=jnp.float32) + b_ref[...]
        if l + 1 < n_layers:
            h = jnp.maximum(y, 0.0).astype(jnp.bfloat16)   # ReLU, bf16 into next MXU
        else:
            # sigmoid: exp + approx reciprocal both live on the EUP slot.
            o_ref[...] = pl.reciprocal(1.0 + jnp.exp(-y), approx=True).astype(o_ref.dtype)


def _fused_forward(x_p, weights, biases):
    """x_p: (Mp, K0p) bf16; weights[l]: (Kp_l, Np_l) bf16; biases[l]: (1, Np_l) f32."""
    Mp, K0p = x_p.shape
    n_layers = len(weights)
    NLp = weights[-1].shape[1]

    tm = Mp if Mp <= _TM_CAP else _TM_CAP   # Mp is a multiple of tm by construction
    grid = (Mp // tm,)

    in_specs = [pl.BlockSpec((tm, K0p), lambda i: (i, 0))]
    operands = [x_p]
    for w, b in zip(weights, biases):
        in_specs.append(pl.BlockSpec(w.shape, lambda i: (0, 0)))  # whole weight resident
        in_specs.append(pl.BlockSpec(b.shape, lambda i: (0, 0)))
        operands.extend([w, b])

    flops = sum(2 * Mp * w.shape[0] * w.shape[1] for w in weights)
    bytes_accessed = (x_p.size * 2
                      + sum(w.size * 2 for w in weights)
                      + sum(b.size * 4 for b in biases)
                      + Mp * NLp * 4)

    return pl.pallas_call(
        functools.partial(_fused_mlp_kernel, n_layers=n_layers),
        out_shape=jax.ShapeDtypeStruct((Mp, NLp), jnp.float32),
        grid=grid,
        in_specs=in_specs,
        out_specs=pl.BlockSpec((tm, NLp), lambda i: (i, 0)),
        compiler_params=pltpu.CompilerParams(
            dimension_semantics=("parallel",),
            vmem_limit_bytes=_VMEM_LIMIT,
        ),
        cost_estimate=pl.CostEstimate(
            flops=flops, transcendentals=Mp * NLp, bytes_accessed=bytes_accessed),
    )(*operands)


# ------------------- fallback: per-layer K-tiled linear+act -------------------

def _linear_act_kernel(x_ref, w_ref, b_ref, o_ref, acc_ref, *, act, nk):
    k = pl.program_id(2)
    part = jnp.dot(x_ref[...], w_ref[...], preferred_element_type=jnp.float32)

    @pl.when(k == 0)
    def _():
        acc_ref[...] = part + b_ref[...]        # fold bias into the init step

    @pl.when(k > 0)
    def _():
        acc_ref[...] += part

    @pl.when(k == nk - 1)
    def _():
        y = acc_ref[...]
        if act == "relu":
            y = jnp.maximum(y, 0.0)
        elif act == "sigmoid":
            y = pl.reciprocal(1.0 + jnp.exp(-y), approx=True)
        o_ref[...] = y.astype(o_ref.dtype)


def _linear_act(x_p, w_p, b_p, act, out_dtype):
    """act(x_p @ w_p + b_p) on pre-padded operands: x_p (Mp,Kp) bf16, w_p (Kp,Np) bf16."""
    Mp, Kp = x_p.shape
    Kw, Np = w_p.shape
    assert Kp == Kw, (Kp, Kw)

    tm = Mp if Mp <= _TM_CAP else _TM_CAP
    tn = _pick_tile(Np, _TN_CAP)
    if Np // tn < 2 and Np >= 2 * _LANE:
        # v7x megacore: give the parallel N axis >= 2 grid points to shard.
        tn = _pick_tile(Np, Np // 2)
    tk = _pick_tile(Kp, _TK_CAP)
    nk = Kp // tk

    if nk >= 3:
        # 3-deep weight buffering only pays off when the K loop actually streams.
        w_spec = pl.BlockSpec((tk, tn), lambda i, j, k: (k, j),
                              pipeline_mode=pl.Buffered(3))
    else:
        w_spec = pl.BlockSpec((tk, tn), lambda i, j, k: (k, j))

    return pl.pallas_call(
        functools.partial(_linear_act_kernel, act=act, nk=nk),
        out_shape=jax.ShapeDtypeStruct((Mp, Np), out_dtype),
        grid=(Mp // tm, Np // tn, nk),
        in_specs=[
            pl.BlockSpec((tm, tk), lambda i, j, k: (i, k)),
            w_spec,
            pl.BlockSpec((1, tn), lambda i, j, k: (0, j)),
        ],
        out_specs=pl.BlockSpec((tm, tn), lambda i, j, k: (i, j)),
        scratch_shapes=[pltpu.VMEM((tm, tn), jnp.float32)],
        compiler_params=pltpu.CompilerParams(
            dimension_semantics=("parallel", "parallel", "arbitrary"),
            vmem_limit_bytes=_VMEM_LIMIT,
        ),
        cost_estimate=pl.CostEstimate(
            flops=2 * Mp * Kp * Np,
            transcendentals=(Mp * Np) if act == "sigmoid" else 0,
            bytes_accessed=(Mp * Kp + Kp * Np) * 2 + Np * 4
                           + Mp * Np * jnp.dtype(out_dtype).itemsize),
    )(x_p, w_p, b_p)


# --------------------------- parameters / forward -----------------------------

def init_params(key, layers, sigma_w, scaling):
    """Matches MLP.reset_parameters: W ~ N(0,1)*sigma_w (optionally /sqrt(fan_in)), b = 0."""
    params = []
    for l_in, l_out in zip(layers[:-1], layers[1:]):
        key, wkey = jax.random.split(key)
        w = jax.random.normal(wkey, (l_in, l_out), jnp.float32) * sigma_w
        if scaling:
            w = w / jnp.sqrt(jnp.float32(l_in))
        b = jnp.zeros((l_out,), jnp.float32)
        params.append({"w": w, "b": b})
    return params


def prepare_params(params):
    """Pre-pad + pre-cast ONCE, outside the jitted forward.

    Weights -> bf16, (K, N) padded to multiples of 128 so each layer's padded
    input width equals the previous layer's padded output width (pads are zero,
    so they contribute nothing). Biases -> f32 (1, Np).
    """
    prepared = []
    for layer in params:
        w, b = layer["w"], layer["b"]
        K, N = w.shape
        Kp = _round_up(K, _LANE)
        Np = _round_up(N, _LANE)
        wp = jnp.pad(w, ((0, Kp - K), (0, Np - N))).astype(jnp.bfloat16)
        bp = jnp.pad(b, (0, Np - N)).astype(jnp.float32).reshape(1, Np)
        prepared.append((wp, bp))
    return tuple(prepared)


@functools.partial(jax.jit, static_argnames=("n_out", "use_fused"))
def forward(prepared, x, n_out, use_fused=True):
    weights = tuple(w for w, _ in prepared)
    biases = tuple(b for _, b in prepared)

    M = x.shape[0]
    x = x.reshape(M, -1).astype(jnp.float32)       # x.view(x.size(0), -1)
    K0 = x.shape[1]
    K0p = weights[0].shape[0]

    tm = _round_up(M, _SUBLANE_BF16) if M <= _TM_CAP else _TM_CAP
    Mp = _round_up(M, tm)
    x_p = jnp.pad(x, ((0, Mp - M), (0, K0p - K0))).astype(jnp.bfloat16)

    # Fuse the whole MLP when all (padded bf16) weights fit comfortably in VMEM.
    resident = sum(w.size * 2 + b.size * 4 for w, b in prepared)
    per_step = 2 * (tm * K0p * 2 + tm * weights[-1].shape[1] * 4)
    if use_fused and resident + per_step < _FUSED_VMEM_BUDGET:
        out = _fused_forward(x_p, weights, biases)
    else:
        h = x_p
        for w, b in prepared[:-1]:
            h = _linear_act(h, w, b, act="relu", out_dtype=jnp.bfloat16)
        out = _linear_act(h, weights[-1], biases[-1], act="sigmoid",
                          out_dtype=jnp.float32)

    return out[:M, :n_out]


def forward_ref(params, x):
    """Pure-JAX f32 reference for a relaxed-tolerance check."""
    x = x.reshape(x.shape[0], -1).astype(jnp.float32)
    for layer in params[:-1]:
        x = jnp.maximum(x @ layer["w"] + layer["b"], 0.0)
    x = x @ params[-1]["w"] + params[-1]["b"]
    return jax.nn.sigmoid(x)


# ------------------------------------ main ------------------------------------

if __name__ == "__main__":
    key = jax.random.PRNGKey(0)
    pkey, xkey = jax.random.split(key)

    # batch=2, input flattened to 4*16*16 = 1024 features.
    layers = [1024, 256, 64, 1]
    sigma_w = 1.0
    scaling = True

    params = init_params(pkey, layers, sigma_w, scaling)
    prepared = prepare_params(params)            # bf16 / padded, once, outside jit
    x = jax.random.normal(xkey, (2, 4, 16, 16), jnp.float32)

    ref = forward_ref(params, x)

    # Fused single-pallas_call path (the fast path for this workload).
    out = jax.block_until_ready(forward(prepared, x, n_out=layers[-1], use_fused=True))
    assert out.shape == (2, 1), out.shape
    assert bool(jnp.all(jnp.isfinite(out)))
    # approx reciprocal can land an ulp or two outside [0,1]; allow tiny slack.
    assert bool(jnp.all((out > -1e-4) & (out < 1.0 + 1e-4)))
    assert bool(jnp.max(jnp.abs(out - ref)) < 5e-2), jnp.max(jnp.abs(out - ref))

    # Per-layer K-tiled fallback path (used when weights do not fit VMEM).
    out2 = jax.block_until_ready(forward(prepared, x, n_out=layers[-1], use_fused=False))
    assert out2.shape == (2, 1), out2.shape
    assert bool(jnp.max(jnp.abs(out2 - ref)) < 5e-2), jnp.max(jnp.abs(out2 - ref))

    print("KERNEL_OK")
</pallas_src>

<mosaic_0001>
module attributes {stable_mosaic.version = 11 : i64} {
  func.func @_fused_mlp_kernel(%arg0: i32, %arg1: memref<16x1024xbf16, #tpu.memory_space<vmem>>, %arg2: memref<1024x256xbf16, #tpu.memory_space<vmem>>, %arg3: memref<1x256xf32, #tpu.memory_space<vmem>>, %arg4: memref<256x128xbf16, #tpu.memory_space<vmem>>, %arg5: memref<1x128xf32, #tpu.memory_space<vmem>>, %arg6: memref<128x128xbf16, #tpu.memory_space<vmem>>, %arg7: memref<1x128xf32, #tpu.memory_space<vmem>>, %arg8: memref<16x128xf32, #tpu.memory_space<vmem>>) attributes {dimension_semantics = [#tpu.dimension_semantics<parallel>], iteration_bounds = array<i64: 1>, scalar_prefetch = 0 : i64, scratch_operands = 0 : i64, tpu.core_type = #tpu.core_type<tc>, window_params = [{transform_indices = @transform_0, window_bounds = array<i64: 16, 1024>}, {pipeline_mode = #tpu.pipeline_mode<synchronous>, transform_indices = @transform_1, window_bounds = array<i64: 1024, 256>}, {pipeline_mode = #tpu.pipeline_mode<synchronous>, transform_indices = @transform_2, window_bounds = array<i64: 1, 256>}, {pipeline_mode = #tpu.pipeline_mode<synchronous>, transform_indices = @transform_3, window_bounds = array<i64: 256, 128>}, {pipeline_mode = #tpu.pipeline_mode<synchronous>, transform_indices = @transform_4, window_bounds = array<i64: 1, 128>}, {pipeline_mode = #tpu.pipeline_mode<synchronous>, transform_indices = @transform_5, window_bounds = array<i64: 128, 128>}, {pipeline_mode = #tpu.pipeline_mode<synchronous>, transform_indices = @transform_6, window_bounds = array<i64: 1, 128>}, {transform_indices = @transform_7, window_bounds = array<i64: 16, 128>}]} {
    %c0 = arith.constant 0 : index
    %c0_0 = arith.constant 0 : index
    %0 = vector.load %arg1[%c0, %c0_0] : memref<16x1024xbf16, #tpu.memory_space<vmem>>, vector<16x1024xbf16>
    %c0_1 = arith.constant 0 : index
    %c0_2 = arith.constant 0 : index
    %1 = vector.load %arg2[%c0_1, %c0_2] : memref<1024x256xbf16, #tpu.memory_space<vmem>>, vector<1024x256xbf16>
    %cst = arith.constant dense<0.000000e+00> : vector<16x256xf32>
    %2 = tpu.matmul %0, %1, %cst {dimension_numbers = #tpu.dot_dimension_numbers<[1], [0], [0], [1], [0, 0, 1, 1], [], []>} : vector<16x1024xbf16>, vector<1024x256xbf16>, vector<16x256xf32> -> vector<16x256xf32>
    %c0_3 = arith.constant 0 : index
    %c0_4 = arith.constant 0 : index
    %3 = vector.load %arg3[%c0_3, %c0_4] : memref<1x256xf32, #tpu.memory_space<vmem>>, vector<1x256xf32>
    %4 = vector.broadcast %3 : vector<1x256xf32> to vector<16x256xf32>
    %5 = arith.addf %2, %4 : vector<16x256xf32>
    %cst_5 = arith.constant 0.000000e+00 : f32
    %6 = vector.broadcast %cst_5 : f32 to vector<16x256xf32>
    %7 = arith.maximumf %5, %6 : vector<16x256xf32>
    %8 = arith.truncf %7 : vector<16x256xf32> to vector<16x256xbf16>
    %c0_6 = arith.constant 0 : index
    %c0_7 = arith.constant 0 : index
    %9 = vector.load %arg4[%c0_6, %c0_7] : memref<256x128xbf16, #tpu.memory_space<vmem>>, vector<256x128xbf16>
    %cst_8 = arith.constant dense<0.000000e+00> : vector<16x128xf32>
    %10 = tpu.matmul %8, %9, %cst_8 {dimension_numbers = #tpu.dot_dimension_numbers<[1], [0], [0], [1], [0, 0, 1, 1], [], []>} : vector<16x256xbf16>, vector<256x128xbf16>, vector<16x128xf32> -> vector<16x128xf32>
    %c0_9 = arith.constant 0 : index
    %c0_10 = arith.constant 0 : index
    %11 = vector.load %arg5[%c0_9, %c0_10] : memref<1x128xf32, #tpu.memory_space<vmem>>, vector<1x128xf32>
    %12 = vector.broadcast %11 : vector<1x128xf32> to vector<16x128xf32>
    %13 = arith.addf %10, %12 : vector<16x128xf32>
    %cst_11 = arith.constant 0.000000e+00 : f32
    %14 = vector.broadcast %cst_11 : f32 to vector<16x128xf32>
    %15 = arith.maximumf %13, %14 : vector<16x128xf32>
    %16 = arith.truncf %15 : vector<16x128xf32> to vector<16x128xbf16>
    %c0_12 = arith.constant 0 : index
    %c0_13 = arith.constant 0 : index
    %17 = vector.load %arg6[%c0_12, %c0_13] : memref<128x128xbf16, #tpu.memory_space<vmem>>, vector<128x128xbf16>
    %cst_14 = arith.constant dense<0.000000e+00> : vector<16x128xf32>
    %18 = tpu.matmul %16, %17, %cst_14 {dimension_numbers = #tpu.dot_dimension_numbers<[1], [0], [0], [1], [0, 0, 1, 1], [], []>} : vector<16x128xbf16>, vector<128x128xbf16>, vector<16x128xf32> -> vector<16x128xf32>
    %c0_15 = arith.constant 0 : index
    %c0_16 = arith.constant 0 : index
    %19 = vector.load %arg7[%c0_15, %c0_16] : memref<1x128xf32, #tpu.memory_space<vmem>>, vector<1x128xf32>
    %20 = vector.broadcast %19 : vector<1x128xf32> to vector<16x128xf32>
    %21 = arith.addf %18, %20 : vector<16x128xf32>
    %cst_17 = arith.constant 0.000000e+00 : f32
    %22 = vector.broadcast %cst_17 : f32 to vector<16x128xf32>
    %23 = arith.subf %22, %21 : vector<16x128xf32>
    %24 = math.exp %23 : vector<16x128xf32>
    %cst_18 = arith.constant 1.000000e+00 : f32
    %25 = vector.broadcast %cst_18 : f32 to vector<16x128xf32>
    %26 = arith.addf %25, %24 : vector<16x128xf32>
    %27 = tpu.reciprocal %26 {approx = true} : vector<16x128xf32> -> vector<16x128xf32>
    %c0_19 = arith.constant 0 : index
    %c0_20 = arith.constant 0 : index
    %28 = vector.load %arg8[%c0_19, %c0_20] : memref<16x128xf32, #tpu.memory_space<vmem>>, vector<16x128xf32>
    tpu.vector_store %arg8[%c0_19, %c0_20], %27 {strides = array<i32>} : memref<16x128xf32, #tpu.memory_space<vmem>>, vector<16x128xf32>,
    return
  }
  func.func @transform_0(%arg0: i32) -> (i32, i32) {
    %c0_i32 = arith.constant 0 : i32
    %c0_i32_0 = arith.constant 0 : i32
    return %arg0, %c0_i32 : i32, i32
  }
  func.func @transform_1(%arg0: i32) -> (i32, i32) {
    %c0_i32 = arith.constant 0 : i32
    %c0_i32_0 = arith.constant 0 : i32
    %c0_i32_1 = arith.constant 0 : i32
    return %c0_i32, %c0_i32_0 : i32, i32
  }
  func.func @transform_2(%arg0: i32) -> (i32, i32) {
    %c0_i32 = arith.constant 0 : i32
    %c0_i32_0 = arith.constant 0 : i32
    %c0_i32_1 = arith.constant 0 : i32
    return %c0_i32, %c0_i32_0 : i32, i32
  }
  func.func @transform_3(%arg0: i32) -> (i32, i32) {
    %c0_i32 = arith.constant 0 : i32
    %c0_i32_0 = arith.constant 0 : i32
    %c0_i32_1 = arith.constant 0 : i32
    return %c0_i32, %c0_i32_0 : i32, i32
  }
  func.func @transform_4(%arg0: i32) -> (i32, i32) {
    %c0_i32 = arith.constant 0 : i32
    %c0_i32_0 = arith.constant 0 : i32
    %c0_i32_1 = arith.constant 0 : i32
    return %c0_i32, %c0_i32_0 : i32, i32
  }
  func.func @transform_5(%arg0: i32) -> (i32, i32) {
    %c0_i32 = arith.constant 0 : i32
    %c0_i32_0 = arith.constant 0 : i32
    %c0_i32_1 = arith.constant 0 : i32
    return %c0_i32, %c0_i32_0 : i32, i32
  }
  func.func @transform_6(%arg0: i32) -> (i32, i32) {
    %c0_i32 = arith.constant 0 : i32
    %c0_i32_0 = arith.constant 0 : i32
    %c0_i32_1 = arith.constant 0 : i32
    return %c0_i32, %c0_i32_0 : i32, i32
  }
  func.func @transform_7(%arg0: i32) -> (i32, i32) {
    %c0_i32 = arith.constant 0 : i32
    %c0_i32_0 = arith.constant 0 : i32
    return %arg0, %c0_i32 : i32, i32
  }
}

</mosaic_0001>

<bundles_post_ra>
// kernel: forward.1
= control target key start
LH: loop header
LB: loop body
LE: loop exit
PB: predicated region body
PF: predicated region fallthrough
CT: control target
= control target key end

     0   :  { %12 = vsyncpa [#allocation3], 0  ;;  %s1837_s24 = smov [#allocation2]   ;;  %s2029_s0 = inlined_call_operand.vmem [shape: bf16[16,1024], index: 0, kind: input, shape index: {}]   ;;  %s2030_s1 = inlined_call_operand.hbm [shape: bf16[1024,256], index: 1, kind: input, shape index: {}]   ;;  %s2031_s2 = inlined_call_operand.vmem [shape: f32[1,256], index: 2, kind: input, shape index: {}]   ;;  %s2032_s3 = inlined_call_operand.vmem [shape: bf16[256,128], index: 3, kind: input, shape index: {}]   ;;  %s2033_s4 = inlined_call_operand.vmem [shape: f32[1,128], index: 4, kind: input, shape index: {}]   ;;  %s2034_s5 = inlined_call_operand.vmem [shape: bf16[128,128], index: 5, kind: input, shape index: {}]   ;;  %s2035_s6 = inlined_call_operand.vmem [shape: f32[1,128], index: 6, kind: input, shape index: {}]   ;;  %s2036_s7 = inlined_call_operand.vmem [shape: f32[16,128], index: 7, kind: output, shape index: {}]  }
   0x1   :  { %s20_s25 = sshll.u32 %s1837_s24, 4  ;;  %s1813_s28 = scalar_lea.hbm %s2030_s1, 16384  ;;  %s21_s25 = int_to_ptr.vmem [resolvable:$true] %s20_s25 }
   0x2   :  { %p1814_p0 = scmp.ne.s32.totalorder %s2030_s1, %s1813_s28  ;;  %p1817_p1 = scmp.lt.u32.totalorder %s1813_s28, %s2030_s1 }
   0x4   :  { %p1819_p2 = pnand %p1817_p1, %p1814_p0 }
   0x6   :  { %1822 = shalt.err (!%p1819_p2)
}
   0x7   :  { %s1823_s10 = scalar_lea.vmem %s21_s25, 16384  ;;  %p1828_p4 = scmp.lt.s32.totalorder %s21_s25, %s21_s25 }
   0x8   :  { %p1824_p3 = scmp.ne.s32.totalorder %s21_s25, %s1823_s10  ;;  %p1829_p5 = scmp.lt.s32.totalorder %s1823_s10, %s1823_s10 }
   0xa   :  { %p1830_p6 = por %p1829_p5, %p1828_p4 }
   0xc   :  { %p1831_p7 = pnand %p1830_p6, %p1824_p3 }
   0xe   :  { %1834 = shalt.err (!%p1831_p7)
}
   0xf   :  { %s1838_s11 = smov 128   ;;  %s1839_s12 = smov 8  }
  0x10   :  { %26 = dma.hbm_to_vmem [thread:$0]  %s2030_s1, 16384, %s21_s25, [#allocation3], %s1838_s11, %s1838_s11, %s1839_s12  }
  0x11   :  { %1835 = dma.done.wait [#allocation3], 16384  }
  0x12   :  { %1836 = vsyncadd [#allocation3], 4294950912  ;;  %v1589_v0 = vld [vmem:[#allocation2 + $0x104] ss:$8 sps:$4 sm:$0xff]   ;;  %v1591_v1 = vld [vmem:[#allocation2 + $0x100] ss:$8 sps:$4 sm:$0xff]  }
  0x13   :  { %912 = vmatprep.subr.bf16.mxu0 %v1589_v0  ;;  %v1592_v2 = vld [vmem:[#allocation2 + $0x114] ss:$8 sps:$4 sm:$0xff]   ;;  %v1594_v3 = vld [vmem:[#allocation2 + $0x110] ss:$8 sps:$4 sm:$0xff]   ;;  %v1595_v4 = vld [vmem:[#allocation2 + $0x124] ss:$8 sps:$4 sm:$0xff]  }
  0x14   :  { %913 = vmatpush1.bf16.msra.mxu0 %v1591_v1  ;;  %v1597_v5 = vld [vmem:[#allocation2 + $0x120] ss:$8 sps:$4 sm:$0xff]   ;;  %v1598_v6 = vld [vmem:[#allocation2 + $0x134] ss:$8 sps:$4 sm:$0xff]   ;;  %v1600_v7 = vld [vmem:[#allocation2 + $0x130] ss:$8 sps:$4 sm:$0xff]  }
  0x15   :  { %914 = vmatprep.subr.bf16.mxu0 %v1592_v2  ;;  %v1601_v8 = vld [vmem:[#allocation2 + $0x144] ss:$8 sps:$4 sm:$0xff]   ;;  %v1603_v9 = vld [vmem:[#allocation2 + $0x140] ss:$8 sps:$4 sm:$0xff]   ;;  %v1604_v10 = vld [vmem:[#allocation2 + $0x154] ss:$8 sps:$4 sm:$0xff]  }
  0x16   :  { %v1606_v11 = vld [vmem:[#allocation2 + $0x150] ss:$8 sps:$4 sm:$0xff]   ;;  %v1607_v12 = vld [vmem:[#allocation2 + $0x164] ss:$8 sps:$4 sm:$0xff]   ;;  %v1609_v16 = vld [vmem:[#allocation2 + $0x160] ss:$8 sps:$4 sm:$0xff]  }
  0x17   :  { %v1897_v13 = vld [vmem:[%s2029_s0 + $0x8] sm:$0xff]  ;;  %v1610_v17 = vld [vmem:[#allocation2 + $0x174] ss:$8 sps:$4 sm:$0xff]   ;;  %v1612_v18 = vld [vmem:[#allocation2 + $0x170] ss:$8 sps:$4 sm:$0xff]   ;;  %vm1841_vm0 = vmmov 0  }
  0x18   :  { %915 = vmatpush1.bf16.msra.mxu0 %v1594_v3  ;;  %v1902_v14 = vld [vmem:[%s2029_s0 + $0x28] sm:$0xff]  ;;  %v1616_v21 = vld [vmem:[#allocation2 + $0x194] ss:$8 sps:$4 sm:$0xff]   ;;  %v1618_v22 = vld [vmem:[#allocation2 + $0x190] ss:$8 sps:$4 sm:$0xff]  }
  0x19   :  { %916 = vmatprep.subr.bf16.mxu0 %v1595_v4  ;;  %v1358_v15 = vcombine.high %v1897_v13, %v1902_v14  ;;  %v1613_v19 = vld [vmem:[#allocation2 + $0x184] ss:$8 sps:$4 sm:$0xff]   ;;  %v1615_v20 = vld [vmem:[#allocation2 + $0x180] ss:$8 sps:$4 sm:$0xff]   ;;  %v1622_v25 = vld [vmem:[#allocation2 + $0x1b4] ss:$8 sps:$4 sm:$0xff]   ;;  %v1357_v50 = vcombine.low %v1897_v13, %v1902_v14 }
  0x1a   :  { %v1619_v23 = vld [vmem:[#allocation2 + $0x1a4] ss:$8 sps:$4 sm:$0xff]   ;;  %v1621_v24 = vld [vmem:[#allocation2 + $0x1a0] ss:$8 sps:$4 sm:$0xff]   ;;  %v1624_v26 = vld [vmem:[#allocation2 + $0x1b0] ss:$8 sps:$4 sm:$0xff]  }
  0x1b   :  { %944 = vmatprep.mubr.bf16.mxu0 %v1358_v15  ;;  %v1682_v27 = vld [vmem:[#allocation2 + $0x4] ss:$8 sps:$4 sm:$0xff]   ;;  %v1684_v28 = vld [vmem:[#allocation2] ss:$8 sps:$4 sm:$0xff]   ;;  %v1688_v30 = vld [vmem:[#allocation2 + $0x14] ss:$8 sps:$4 sm:$0xff]  }
  0x1c   :  { %917 = vmatpush1.bf16.msra.mxu0 %v1597_v5  ;;  %v1625_v29 = vld [vmem:[#allocation2 + $0x1c4] ss:$8 sps:$4 sm:$0xff]   ;;  %869 = vmatprep.subr.bf16.mxu1 %v1682_v27  ;;  %v1690_v31 = vld [vmem:[#allocation2 + $0x10] ss:$8 sps:$4 sm:$0xff]   ;;  %v1627_v32 = vld [vmem:[#allocation2 + $0x1c0] ss:$8 sps:$4 sm:$0xff]  }
  0x1d   :  { %918 = vmatprep.subr.bf16.mxu0 %v1598_v6  ;;  %870 = vmatpush1.bf16.msra.mxu1 %v1684_v28  ;;  %v1628_v33 = vld [vmem:[#allocation2 + $0x1d4] ss:$8 sps:$4 sm:$0xff]   ;;  %v1694_v34 = vld [vmem:[#allocation2 + $0x24] ss:$8 sps:$4 sm:$0xff]   ;;  %v1696_v35 = vld [vmem:[#allocation2 + $0x20] ss:$8 sps:$4 sm:$0xff]  }
  0x1e   :  { %871 = vmatprep.subr.bf16.mxu1 %v1688_v30  ;;  %v1630_v36 = vld [vmem:[#allocation2 + $0x1d0] ss:$8 sps:$4 sm:$0xff]   ;;  %v1700_v37 = vld [vmem:[#allocation2 + $0x34] ss:$8 sps:$4 sm:$0xff]   ;;  %v1631_v38 = vld [vmem:[#allocation2 + $0x1e4] ss:$8 sps:$4 sm:$0xff]  }
  0x1f   :  { %v1702_v39 = vld [vmem:[#allocation2 + $0x30] ss:$8 sps:$4 sm:$0xff]   ;;  %v1706_v40 = vld [vmem:[#allocation2 + $0x44] ss:$8 sps:$4 sm:$0xff]   ;;  %v1633_v41 = vld [vmem:[#allocation2 + $0x1e0] ss:$8 sps:$4 sm:$0xff]  }
  0x20   :  { %919 = vmatpush1.bf16.msra.mxu0 %v1600_v7  ;;  %v1634_v42 = vld [vmem:[#allocation2 + $0x1f4] ss:$8 sps:$4 sm:$0xff]   ;;  %v1708_v43 = vld [vmem:[#allocation2 + $0x40] ss:$8 sps:$4 sm:$0xff]   ;;  %v1636_v44 = vld [vmem:[#allocation2 + $0x1f0] ss:$8 sps:$4 sm:$0xff]  }
  0x21   :  { %920 = vmatprep.subr.bf16.mxu0 %v1601_v8  ;;  %872 = vmatpush1.bf16.msra.mxu1 %v1690_v31  ;;  %v1712_v45 = vld [vmem:[#allocation2 + $0x54] ss:$8 sps:$4 sm:$0xff]   ;;  %v1639_v46 = vld [vmem:[#allocation2 + $0x204] ss:$8 sps:$4 sm:$0xff]   ;;  %v1714_v49 = vld [vmem:[#allocation2 + $0x50] ss:$8 sps:$4 sm:$0xff]  }
  0x22   :  { %873 = vmatprep.subr.bf16.mxu1 %v1694_v34  ;;  %v1909_v47 = vld [vmem:[%s2029_s0 + $0x10] sm:$0xff]  ;;  %v1718_v51 = vld [vmem:[#allocation2 + $0x64] ss:$8 sps:$4 sm:$0xff]   ;;  %v1637_v52 = vld [vmem:[#allocation2 + $0x200] ss:$8 sps:$4 sm:$0xff]  }
  0x23   :  { %v1914_v48 = vld [vmem:[%s2029_s0 + $0x30] sm:$0xff]  ;;  %v1720_v55 = vld [vmem:[#allocation2 + $0x60] ss:$8 sps:$4 sm:$0xff]   ;;  %v1645_v58 = vld [vmem:[#allocation2 + $0x224] ss:$8 sps:$4 sm:$0xff]  }
  0x24   :  { %921 = vmatpush1.bf16.msra.mxu0 %v1603_v9  ;;  %v1360_v53 = vcombine.high %v1909_v47, %v1914_v48  ;;  %v1642_v54 = vld [vmem:[#allocation2 + $0x214] ss:$8 sps:$4 sm:$0xff]   ;;  %v1640_v57 = vld [vmem:[#allocation2 + $0x210] ss:$8 sps:$4 sm:$0xff]   ;;  %v1730_v60 = vld [vmem:[#allocation2 + $0x84] ss:$8 sps:$4 sm:$0xff]  }
  0x25   :  { %922 = vmatprep.subr.bf16.mxu0 %v1604_v10  ;;  %874 = vmatpush1.bf16.msra.mxu1 %v1696_v35  ;;  %v1724_v56 = vld [vmem:[#allocation2 + $0x74] ss:$8 sps:$4 sm:$0xff]   ;;  %v1726_v59 = vld [vmem:[#allocation2 + $0x70] ss:$8 sps:$4 sm:$0xff]   ;;  %v1643_v61 = vld [vmem:[#allocation2 + $0x220] ss:$8 sps:$4 sm:$0xff]  }
  0x26   :  { %875 = vmatprep.subr.bf16.mxu1 %v1700_v37  ;;  %v1648_v62 = vld [vmem:[#allocation2 + $0x234] ss:$8 sps:$4 sm:$0xff]   ;;  %v1732_v63 = vld [vmem:[#allocation2 + $0x80] ss:$8 sps:$4 sm:$0xff]   ;;  %v1646_v1 = vld [vmem:[#allocation2 + $0x230] ss:$8 sps:$4 sm:$0xff]  }
  0x27   :  { %v1736_v0 = vld [vmem:[#allocation2 + $0x94] ss:$8 sps:$4 sm:$0xff]   ;;  %v1651_v2 = vld [vmem:[#allocation2 + $0x244] ss:$8 sps:$4 sm:$0xff]   ;;  %v1738_v3 = vld [vmem:[#allocation2 + $0x90] ss:$8 sps:$4 sm:$0xff]  }
  0x28   :  { %923 = vmatpush1.bf16.msra.mxu0 %v1606_v11  ;;  %v1742_v4 = vld [vmem:[#allocation2 + $0xa4] ss:$8 sps:$4 sm:$0xff]   ;;  %v1649_v5 = vld [vmem:[#allocation2 + $0x240] ss:$8 sps:$4 sm:$0xff]   ;;  %v1654_v6 = vld [vmem:[#allocation2 + $0x254] ss:$8 sps:$4 sm:$0xff]  }
  0x29   :  { %924 = vmatprep.subr.bf16.mxu0 %v1607_v12  ;;  %876 = vmatpush1.bf16.msra.mxu1 %v1702_v39  ;;  %v1744_v7 = vld [vmem:[#allocation2 + $0xa0] ss:$8 sps:$4 sm:$0xff]   ;;  %v1748_v8 = vld [vmem:[#allocation2 + $0xb4] ss:$8 sps:$4 sm:$0xff]   ;;  %v1652_v9 = vld [vmem:[#allocation2 + $0x250] ss:$8 sps:$4 sm:$0xff]  }
  0x2a   :  { %877 = vmatprep.subr.bf16.mxu1 %v1706_v40  ;;  %v1657_v10 = vld [vmem:[#allocation2 + $0x264] ss:$8 sps:$4 sm:$0xff]   ;;  %v1750_v11 = vld [vmem:[#allocation2 + $0xb0] ss:$8 sps:$4 sm:$0xff]   ;;  %v1772_v27 = vld [vmem:[#allocation2 + $0xf4] ss:$8 sps:$4 sm:$0xff]  }
  0x2b   :  { %v41_v12 = vld [vmem:[%s2029_s0] sm:$0xff]  ;;  %v1664_v28 = vld [vmem:[#allocation2 + $0x290] ss:$8 sps:$4 sm:$0xff]   ;;  %v1784_v39 = vld [vmem:[%s2032_s3 + $0x8] sm:$0xff]  }
  0x2c   :  { %925 = vmatpush1.bf16.msra.mxu0 %v1609_v16  ;;  %v45_v13 = vld [vmem:[%s2029_s0 + $0x20] sm:$0xff]  ;;  %v1774_v30 = vld [vmem:[#allocation2 + $0xf0] ss:$8 sps:$4 sm:$0xff]  }
  0x2d   :  { %926 = vmatprep.subr.bf16.mxu0 %v1610_v17  ;;  %878 = vmatpush1.bf16.msra.mxu1 %v1708_v43  ;;  %v1754_v14 = vld [vmem:[#allocation2 + $0xc4] ss:$8 sps:$4 sm:$0xff]   ;;  %v1356_v15 = vcombine.high %v41_v12, %v45_v13  ;;  %v1655_v16 = vld [vmem:[#allocation2 + $0x260] ss:$8 sps:$4 sm:$0xff]   ;;  %v1660_v17 = vld [vmem:[#allocation2 + $0x274] ss:$8 sps:$4 sm:$0xff]   ;;  %v1355_v35 = vcombine.low %v41_v12, %v45_v13 }
  0x2e   :  { %879 = vmatprep.subr.bf16.mxu1 %v1712_v45  ;;  %v1781_v31 = vld [vmem:[%s2032_s3 + $0x40] sm:$0xff]   ;;  %v1670_v37 = vld [vmem:[#allocation2 + $0x2b0] ss:$8 sps:$4 sm:$0xff]   ;;  %v1759_v13 = vld [vmem:[#allocation2 + $0x3b4] ss:$8 sps:$4 sm:$0xff]  }
  0x2f   :  { %901 = vmatprep.mubr.bf16.mxu1 %v1356_v15  ;;  %v1782_v34 = vld [vmem:[%s2032_s3] sm:$0xff]   ;;  %v1785_v40 = vld [vmem:[%s2032_s3 + $0x50] sm:$0xff]  }
  0x30   :  { %927 = vmatpush1.bf16.msra.mxu0 %v1612_v18  ;;  %v1756_v18 = vld [vmem:[#allocation2 + $0xc0] ss:$8 sps:$4 sm:$0xff]   ;;  %v1786_v43 = vld [vmem:[%s2032_s3 + $0x10] sm:$0xff]   ;;  %v1765_v15 = vld [vmem:[#allocation2 + $0x3c4] ss:$8 sps:$4 sm:$0xff]  }
  0x31   :  { %928 = vmatprep.subr.bf16.mxu0 %v1613_v19  ;;  %880 = vmatpush1.bf16.msra.mxu1 %v1714_v49  ;;  %v1760_v19 = vld [vmem:[#allocation2 + $0xd4] ss:$8 sps:$4 sm:$0xff]   ;;  %v1676_v45 = vld [vmem:[#allocation2 + $0x2d0] ss:$8 sps:$4 sm:$0xff]   ;;  %v1751_v12 = vld [vmem:[#allocation2 + $0x3a0] ss:$8 sps:$4 sm:$0xff]  }
  0x32   :  { %881 = vmatprep.subr.bf16.mxu1 %v1718_v51  ;;  %v1788_v49 = vld [vmem:[%s2032_s3 + $0x18] sm:$0xff]  }
  0x33   :  { %v1687_v51 = vld [vmem:[#allocation2 + $0x2f4] ss:$8 sps:$4 sm:$0xff]  }
  0x34   :  { %929 = vmatpush1.bf16.msra.mxu0 %v1615_v20  ;;  %v1658_v20 = vld [vmem:[#allocation2 + $0x270] ss:$8 sps:$4 sm:$0xff]  }
  0x35   :  { %930 = vmatprep.subr.bf16.mxu0 %v1616_v21  ;;  %882 = vmatpush1.bf16.msra.mxu1 %v1720_v55  ;;  %v1663_v21 = vld [vmem:[#allocation2 + $0x284] ss:$8 sps:$4 sm:$0xff]   ;;  %v1958_v55 = vld [vmem:[%s2029_s0 + $0x38] sm:$0xff] }
  0x36   :  { %883 = vmatprep.subr.bf16.mxu1 %v1724_v56  ;;  %v1359_v56 = vcombine.low %v1909_v47, %v1914_v48  ;;  %v1717_v47 = vld [vmem:[#allocation2 + $0x344] ss:$8 sps:$4 sm:$0xff]   ;;  %v1715_v48 = vld [vmem:[#allocation2 + $0x340] ss:$8 sps:$4 sm:$0xff]  }
  0x38   :  { %931 = vmatpush1.bf16.msra.mxu0 %v1618_v22  ;;  %v1661_v22 = vld [vmem:[#allocation2 + $0x280] ss:$8 sps:$4 sm:$0xff]  }
  0x39   :  { %932 = vmatprep.subr.bf16.mxu0 %v1619_v23  ;;  %884 = vmatpush1.bf16.msra.mxu1 %v1726_v59  ;;  %v1762_v23 = vld [vmem:[#allocation2 + $0xd0] ss:$8 sps:$4 sm:$0xff]   ;;  %v1699_v59 = vld [vmem:[#allocation2 + $0x314] ss:$8 sps:$4 sm:$0xff]  }
  0x3a   :  { %885 = vmatprep.subr.bf16.mxu1 %v1730_v60  ;;  %v1697_v60 = vld [vmem:[#allocation2 + $0x310] ss:$8 sps:$4 sm:$0xff]  }
  0x3c   :  { %933 = vmatpush1.bf16.msra.mxu0 %v1621_v24  ;;  %v1666_v24 = vld [vmem:[#allocation2 + $0x294] ss:$8 sps:$4 sm:$0xff]  }
  0x3d   :  { %934 = vmatprep.subr.bf16.mxu0 %v1622_v25  ;;  %886 = vmatpush1.bf16.msra.mxu1 %v1732_v63  ;;  %v1766_v25 = vld [vmem:[#allocation2 + $0xe4] ss:$8 sps:$4 sm:$0xff]   ;;  %v1711_v63 = vld [vmem:[#allocation2 + $0x334] ss:$8 sps:$4 sm:$0xff]  }
  0x3e   :  { %887 = vmatprep.subr.bf16.mxu1 %v1736_v0  ;;  %v1709_v0 = vld [vmem:[#allocation2 + $0x330] ss:$8 sps:$4 sm:$0xff]  }
  0x40   :  { %935 = vmatpush1.bf16.msra.mxu0 %v1624_v26  ;;  %v1768_v26 = vld [vmem:[#allocation2 + $0xe0] ss:$8 sps:$4 sm:$0xff]  }
  0x41   :  { %936 = vmatprep.subr.bf16.mxu0 %v1625_v29  ;;  %888 = vmatpush1.bf16.msra.mxu1 %v1738_v3  ;;  %v1669_v29 = vld [vmem:[#allocation2 + $0x2a4] ss:$8 sps:$4 sm:$0xff]  }
  0x42   :  { %889 = vmatprep.subr.bf16.mxu1 %v1742_v4  ;;  %v1729_v3 = vld [vmem:[#allocation2 + $0x364] ss:$8 sps:$4 sm:$0xff]   ;;  %v1727_v4 = vld [vmem:[#allocation2 + $0x360] ss:$8 sps:$4 sm:$0xff]  }
  0x44   :  { %937 = vmatpush1.bf16.msra.mxu0 %v1627_v32  ;;  %v1667_v32 = vld [vmem:[#allocation2 + $0x2a0] ss:$8 sps:$4 sm:$0xff]  }
  0x45   :  { %938 = vmatprep.subr.bf16.mxu0 %v1628_v33  ;;  %890 = vmatpush1.bf16.msra.mxu1 %v1744_v7  ;;  %v1672_v33 = vld [vmem:[#allocation2 + $0x2b4] ss:$8 sps:$4 sm:$0xff]   ;;  %v1741_v7 = vld [vmem:[#allocation2 + $0x384] ss:$8 sps:$4 sm:$0xff]  }
  0x46   :  { %891 = vmatprep.subr.bf16.mxu1 %v1748_v8  ;;  %v1739_v8 = vld [vmem:[#allocation2 + $0x380] ss:$8 sps:$4 sm:$0xff]  }
  0x48   :  { %939 = vmatpush1.bf16.msra.mxu0 %v1630_v36  ;;  %v1783_v36 = vld [vmem:[%s2032_s3 + $0x48] sm:$0xff]  }
  0x49   :  { %940 = vmatprep.subr.bf16.mxu0 %v1631_v38  ;;  %892 = vmatpush1.bf16.msra.mxu1 %v1750_v11  ;;  %v1675_v38 = vld [vmem:[#allocation2 + $0x2c4] ss:$8 sps:$4 sm:$0xff]  }
  0x4a   :  { %893 = vmatprep.subr.bf16.mxu1 %v1754_v14  ;;  %v1753_v11 = vld [vmem:[#allocation2 + $0x3a4] ss:$8 sps:$4 sm:$0xff]   ;;  %v1757_v14 = vld [vmem:[#allocation2 + $0x3b0] ss:$8 sps:$4 sm:$0xff]  }
  0x4c   :  { %941 = vmatpush1.bf16.msra.mxu0 %v1633_v41  ;;  %v1673_v41 = vld [vmem:[#allocation2 + $0x2c0] ss:$8 sps:$4 sm:$0xff]  }
  0x4d   :  { %942 = vmatprep.subr.bf16.mxu0 %v1634_v42  ;;  %894 = vmatpush1.bf16.msra.mxu1 %v1756_v18  ;;  %v1678_v42 = vld [vmem:[#allocation2 + $0x2d4] ss:$8 sps:$4 sm:$0xff]   ;;  %v1769_v18 = vld [vmem:[#allocation2 + $0x3d0] ss:$8 sps:$4 sm:$0xff]  }
  0x4e   :  { %895 = vmatprep.subr.bf16.mxu1 %v1760_v19  ;;  %v1777_v19 = vld [vmem:[#allocation2 + $0x3e4] ss:$8 sps:$4 sm:$0xff]  }
  0x50   :  { %943 = vmatpush1.bf16.msra.mxu0 %v1636_v44  ;;  %v1787_v44 = vld [vmem:[%s2032_s3 + $0x58] sm:$0xff]  }
  0x51   :  { %955 = vmatprep.subr.bf16.mxu0 %v1639_v46  ;;  %896 = vmatpush1.bf16.msra.mxu1 %v1762_v23  ;;  %v1681_v46 = vld [vmem:[#allocation2 + $0x2e4] ss:$8 sps:$4 sm:$0xff]  }
  0x52   :  { %897 = vmatprep.subr.bf16.mxu1 %v1766_v25  ;;  %v1790_v25 = vld [vmem:[%s2032_s3 + $0x20] sm:$0xff]  }
  0x53   :  { %945 = vmatmul.mubr.bf16.vlgmr.msra.gmra.mrb[0].mxu0 %v1357_v50  ;;  %v1679_v50 = vld [vmem:[#allocation2 + $0x2e0] ss:$8 sps:$4 sm:$0xff]  }
  0x54   :  { %956 = vmatpush1.bf16.msra.mxu0 %v1637_v52  ;;  %987 = vmatprep.mubr.bf16.mxu0 %v1360_v53  ;;  %v1685_v52 = vld [vmem:[#allocation2 + $0x2f0] ss:$8 sps:$4 sm:$0xff]   ;;  %v1693_v53 = vld [vmem:[#allocation2 + $0x304] ss:$8 sps:$4 sm:$0xff]  }
  0x55   :  { %957 = vmatprep.subr.bf16.mxu0 %v1642_v54  ;;  %898 = vmatpush1.bf16.msra.mxu1 %v1768_v26  ;;  %v1953_v54 = vld [vmem:[%s2029_s0 + $0x18] sm:$0xff]  ;;  %v1791_v26 = vld [vmem:[%s2032_s3 + $0x68] sm:$0xff]  }
  0x56   :  { %899 = vmatprep.subr.bf16.mxu1 %v1772_v27  ;;  %v1361_v23 = vcombine.low %v1953_v54, %v1958_v55  ;;  %v1792_v27 = vld [vmem:[%s2032_s3 + $0x28] sm:$0xff]  }
  0x58   :  { %958 = vmatpush1.bf16.msra.mxu0 %v1640_v57  ;;  %v1691_v57 = vld [vmem:[#allocation2 + $0x300] ss:$8 sps:$4 sm:$0xff]  }
  0x59   :  { %959 = vmatprep.subr.bf16.mxu0 %v1645_v58  ;;  %900 = vmatpush1.bf16.msra.mxu1 %v1774_v30  ;;  %v1362_v58 = vcombine.high %v1953_v54, %v1958_v55  ;;  %v1795_v30 = vld [vmem:[%s2032_s3 + $0x78] sm:$0xff]  }
  0x5a   :  { %1517 = vmatprep.subr.bf16.mxu1 %v1781_v31  ;;  %v1796_v31 = vld [vmem:[%s2032_s3 + $0x38] sm:$0xff]  }
  0x5c   :  { %960 = vmatpush1.bf16.msra.mxu0 %v1643_v61  ;;  %902 = vmatmul.mubr.bf16.vlgmr.msra.gmra.mrb[0].mxu1 %v1355_v35  ;;  %v1705_v61 = vld [vmem:[#allocation2 + $0x324] ss:$8 sps:$4 sm:$0xff]  }
  0x5d   :  { %961 = vmatprep.subr.bf16.mxu0 %v1648_v62  ;;  %1518 = vmatpush3.bf16.msra.mxu1 %v1782_v34  ;;  %v1703_v62 = vld [vmem:[#allocation2 + $0x320] ss:$8 sps:$4 sm:$0xff]  }
  0x5e   :  { %1519 = vmatprep.subr.bf16.mxu1 %v1783_v36 }
  0x60   :  { %962 = vmatpush1.bf16.msra.mxu0 %v1646_v1  ;;  %v1723_v1 = vld [vmem:[#allocation2 + $0x354] ss:$8 sps:$4 sm:$0xff]  }
  0x61   :  { %963 = vmatprep.subr.bf16.mxu0 %v1651_v2  ;;  %1520 = vmatpush3.bf16.msra.mxu1 %v1784_v39  ;;  %v1721_v2 = vld [vmem:[#allocation2 + $0x350] ss:$8 sps:$4 sm:$0xff]  }
  0x62   :  { %1521 = vmatprep.subr.bf16.mxu1 %v1785_v40  ;;  %v177_v40 = vld [vmem:[%s2031_s2] sm:$0x3] }
  0x64   :  { %964 = vmatpush1.bf16.msra.mxu0 %v1649_v5  ;;  %v1735_v5 = vld [vmem:[#allocation2 + $0x374] ss:$8 sps:$4 sm:$0xff]  }
  0x65   :  { %965 = vmatprep.subr.bf16.mxu0 %v1654_v6  ;;  %1522 = vmatpush3.bf16.msra.mxu1 %v1786_v43  ;;  %v1733_v6 = vld [vmem:[#allocation2 + $0x370] ss:$8 sps:$4 sm:$0xff]  }
  0x66   :  { %1523 = vmatprep.subr.bf16.mxu1 %v1787_v44 }
  0x68   :  { %966 = vmatpush1.bf16.msra.mxu0 %v1652_v9  ;;  %v1747_v9 = vld [vmem:[#allocation2 + $0x394] ss:$8 sps:$4 sm:$0xff]  }
  0x69   :  { %967 = vmatprep.subr.bf16.mxu0 %v1657_v10  ;;  %1524 = vmatpush3.bf16.msra.mxu1 %v1788_v49  ;;  %v1745_v10 = vld [vmem:[#allocation2 + $0x390] ss:$8 sps:$4 sm:$0xff]  }
  0x6c   :  { %968 = vmatpush1.bf16.msra.mxu0 %v1655_v16  ;;  %v1763_v16 = vld [vmem:[#allocation2 + $0x3c0] ss:$8 sps:$4 sm:$0xff]  }
  0x6d   :  { %969 = vmatprep.subr.bf16.mxu0 %v1660_v17  ;;  %v1771_v17 = vld [vmem:[#allocation2 + $0x3d4] ss:$8 sps:$4 sm:$0xff]  }
  0x70   :  { %970 = vmatpush1.bf16.msra.mxu0 %v1658_v20  ;;  %v1775_v20 = vld [vmem:[#allocation2 + $0x3e0] ss:$8 sps:$4 sm:$0xff]  }
  0x71   :  { %971 = vmatprep.subr.bf16.mxu0 %v1663_v21  ;;  %v1780_v21 = vld [vmem:[#allocation2 + $0x3f4] ss:$8 sps:$4 sm:$0xff]  }
  0x74   :  { %972 = vmatpush1.bf16.msra.mxu0 %v1661_v22  ;;  %v1778_v22 = vld [vmem:[#allocation2 + $0x3f0] ss:$8 sps:$4 sm:$0xff]  }
  0x75   :  { %973 = vmatprep.subr.bf16.mxu0 %v1666_v24  ;;  %v1789_v24 = vld [vmem:[%s2032_s3 + $0x60] sm:$0xff]  }
  0x76   :  { %1525 = vmatprep.subr.bf16.mxu1 %v1789_v24 }
  0x77   :  { %1526 = vmatpush3.bf16.msra.mxu1 %v1790_v25 }
  0x78   :  { %974 = vmatpush1.bf16.msra.mxu0 %v1664_v28  ;;  %1527 = vmatprep.subr.bf16.mxu1 %v1791_v26  ;;  %v1793_v28 = vld [vmem:[%s2032_s3 + $0x70] sm:$0xff]  }
  0x79   :  { %975 = vmatprep.subr.bf16.mxu0 %v1669_v29  ;;  %v1794_v29 = vld [vmem:[%s2032_s3 + $0x30] sm:$0xff]  }
  0x7b   :  { %1528 = vmatpush3.bf16.msra.mxu1 %v1792_v27 }
  0x7c   :  { %976 = vmatpush1.bf16.msra.mxu0 %v1667_v32  ;;  %1529 = vmatprep.subr.bf16.mxu1 %v1793_v28  ;;  %v1840_v32 = vmov 0.0  }
  0x7d   :  { %977 = vmatprep.subr.bf16.mxu0 %v1672_v33 }
  0x7f   :  { %1530 = vmatpush3.bf16.msra.mxu1 %v1794_v29 }
  0x80   :  { %978 = vmatpush1.bf16.msra.mxu0 %v1670_v37  ;;  %1531 = vmatprep.subr.bf16.mxu1 %v1795_v30  ;;  %v179_v37 = vlaneseq }
  0x81   :  { %979 = vmatprep.subr.bf16.mxu0 %v1675_v38 }
  0x82   :  { %v180_v38 = vshrl.u32 %v179_v37, 7 }
  0x83   :  { %1532 = vmatpush3.bf16.msra.mxu1 %v1796_v31 }
  0x84   :  { %980 = vmatpush1.bf16.msra.mxu0 %v1673_v41  ;;  %1548 = vmatprep.subr.bf16.mxu1 %v1840_v32  ;;  %v181_v39 = vsub.s32 0, %v180_v38  ;;  %v185_v41 = vsub.s32 1, %v180_v38 }
  0x85   :  { %981 = vmatprep.subr.bf16.mxu0 %v1678_v42 }
  0x86   :  { %v182_v42 = vrot.slane %v177_v40, %v181_v39  ;;  %v186_v43 = vrot.slane %v177_v40, %v185_v41 }
  0x88   :  { %982 = vmatpush1.bf16.msra.mxu0 %v1676_v45 }
  0x89   :  { %983 = vmatprep.subr.bf16.mxu0 %v1681_v46 }
  0x8c   :  { %984 = vmatpush1.bf16.msra.mxu0 %v1679_v50 }
  0x8d   :  { %985 = vmatprep.subr.bf16.mxu0 %v1687_v51 }
  0x90   :  { %986 = vmatpush1.bf16.msra.mxu0 %v1685_v52 }
  0x91   :  { %998 = vmatprep.subr.bf16.mxu0 %v1693_v53 }
  0x93   :  { %988 = vmatmul.mubr.bf16.vlgmr.msra.gmra.mrb[0].mxu0 %v1359_v56 }
  0x94   :  { %999 = vmatpush1.bf16.msra.mxu0 %v1691_v57  ;;  %1030 = vmatprep.mubr.bf16.mxu0 %v1362_v58 }
  0x95   :  { %1000 = vmatprep.subr.bf16.mxu0 %v1699_v59 }
  0x98   :  { %1001 = vmatpush1.bf16.msra.mxu0 %v1697_v60 }
  0x99   :  { %1002 = vmatprep.subr.bf16.mxu0 %v1705_v61 }
  0x9c   :  { %1003 = vmatpush1.bf16.msra.mxu0 %v1703_v62 }
  0x9d   :  { %1004 = vmatprep.subr.bf16.mxu0 %v1711_v63 }
  0xa0   :  { %1005 = vmatpush1.bf16.msra.mxu0 %v1709_v0  ;;  %v1797_v0 = vld [vmem:[%s2034_s5] sm:$0xff]  }
  0xa1   :  { %1006 = vmatprep.subr.bf16.mxu0 %v1717_v47  ;;  %v1798_v47 = vld [vmem:[%s2034_s5 + $0x8] sm:$0xff]  }
  0xa4   :  { %1007 = vmatpush1.bf16.msra.mxu0 %v1715_v48  ;;  %v1799_v48 = vld [vmem:[%s2034_s5 + $0x10] sm:$0xff]  }
  0xa5   :  { %1008 = vmatprep.subr.bf16.mxu0 %v1723_v1  ;;  %v1800_v1 = vld [vmem:[%s2034_s5 + $0x18] sm:$0xff]  }
  0xa8   :  { %1009 = vmatpush1.bf16.msra.mxu0 %v1721_v2  ;;  %v1801_v2 = vld [vmem:[%s2034_s5 + $0x20] sm:$0xff]  }
  0xa9   :  { %1010 = vmatprep.subr.bf16.mxu0 %v1729_v3  ;;  %v1802_v3 = vld [vmem:[%s2034_s5 + $0x28] sm:$0xff]  }
  0xac   :  { %1011 = vmatpush1.bf16.msra.mxu0 %v1727_v4  ;;  %v1803_v4 = vld [vmem:[%s2034_s5 + $0x30] sm:$0xff]  }
  0xad   :  { %1012 = vmatprep.subr.bf16.mxu0 %v1735_v5  ;;  %v1804_v5 = vld [vmem:[%s2034_s5 + $0x38] sm:$0xff]  }
  0xb0   :  { %1013 = vmatpush1.bf16.msra.mxu0 %v1733_v6 }
  0xb1   :  { %1014 = vmatprep.subr.bf16.mxu0 %v1741_v7  ;;  %v1491_v7 = vld [vmem:[%s2033_s4] ss:$0 sm:$0xff] }
  0xb4   :  { %1015 = vmatpush1.bf16.msra.mxu0 %v1739_v8 }
  0xb5   :  { %1016 = vmatprep.subr.bf16.mxu0 %v1747_v9 }
  0xb8   :  { %1017 = vmatpush1.bf16.msra.mxu0 %v1745_v10 }
  0xb9   :  { %1018 = vmatprep.subr.bf16.mxu0 %v1753_v11 }
  0xbc   :  { %1019 = vmatpush1.bf16.msra.mxu0 %v1751_v12 }
  0xbd   :  { %1020 = vmatprep.subr.bf16.mxu0 %v1759_v13 }
  0xc0   :  { %1021 = vmatpush1.bf16.msra.mxu0 %v1757_v14 }
  0xc1   :  { %1022 = vmatprep.subr.bf16.mxu0 %v1765_v15 }
  0xc4   :  { %1023 = vmatpush1.bf16.msra.mxu0 %v1763_v16 }
  0xc5   :  { %1024 = vmatprep.subr.bf16.mxu0 %v1771_v17 }
  0xc8   :  { %1025 = vmatpush1.bf16.msra.mxu0 %v1769_v18  ;;  %v1508_v18 = vld [vmem:[%s2035_s6] ss:$0 sm:$0xff] }
  0xc9   :  { %1026 = vmatprep.subr.bf16.mxu0 %v1777_v19 }
  0xcc   :  { %1027 = vmatpush1.bf16.msra.mxu0 %v1775_v20 }
  0xcd   :  { %1028 = vmatprep.subr.bf16.mxu0 %v1780_v21 }
  0xd0   :  { %1029 = vmatpush1.bf16.msra.mxu0 %v1778_v22 }
  0xd3   :  { %1031 = vmatmul.mubr.bf16.vlgmr.msra.gmra.mrb[0].mxu0 %v1361_v23 }
 0x12f   :  { %v903_v33 = vpop.f32.mrb[0].mxu1 }
 0x130   :  { %v905_v34 = vpop.f32.mrb[1].mxu1  ;;  %v904_v44 = vadd.f32 %v903_v33, %v182_v42 }
 0x131   :  { %v907_v35 = vpop.f32.mrb[2].mxu1  ;;  %v906_v45 = vadd.f32 %v905_v34, %v186_v43 }
 0x132   :  { %v909_v36 = vpop.f32.mrb[3].mxu1  ;;  %v908_v49 = vadd.f32 %v907_v35, %v182_v42 }
 0x133   :  { %v910_v52 = vadd.f32 %v909_v36, %v186_v43 }
 0x1a6   :  { %v1032_v46 = vpop.f32.mrb[0].mxu0 }
 0x1a7   :  { %v1569_v50 = vadd.f32 %v1032_v46, %v904_v44  ;;  %v1034_v51 = vpop.f32.mrb[1].mxu0 }
 0x1a8   :  { %v1571_v53 = vadd.f32 %v1034_v51, %v906_v45  ;;  %v1036_v54 = vpop.f32.mrb[2].mxu0 }
 0x1a9   :  { %v1573_v55 = vadd.f32 %v1036_v54, %v908_v49  ;;  %v1038_v56 = vpop.f32.mrb[3].mxu0  ;;  %v1041_v58 = vmax.f32 %v1569_v50, 0.0 }
 0x1aa   :  { %v1575_v57 = vadd.f32 %v1038_v56, %v910_v52  ;;  %v1042_v60 = vmax.f32 %v1571_v53, 0.0 }
 0x1ab   :  { %v1043_v59 = vmax.f32 %v1573_v55, 0.0 }
 0x1ac   :  { %v1044_v61 = vmax.f32 %v1575_v57, 0.0 }
 0x1ad   :  { %v1045_v62 = vpack.c.bf16 %v1043_v59, %v1041_v58 }
 0x1ae   :  { %v1046_v63 = vpack.c.bf16 %v1044_v61, %v1042_v60 }
 0x1b0   :  { %1214 = vmatprep.mubr.bf16.mxu1 %v1046_v63 }
 0x1b1   :  { %1215 = vmatmul.mubr.bf16.vlgmr.msra.gmra.mrb[4].mxu1 %v1045_v62 }
 0x1b2   :  { %1549 = vmatpush3.bf16.msra.mxu1 %v1797_v0  ;;  %1564 = vmatprep.mubr.msk.bf16.mxu1 %vm1841_vm0, %v1840_v32 }
 0x1b3   :  { %1550 = vmatprep.subr.bf16.mxu1 %v1840_v32 }
 0x1b6   :  { %1551 = vmatpush3.bf16.msra.mxu1 %v1798_v47 }
 0x1b7   :  { %1552 = vmatprep.subr.bf16.mxu1 %v1840_v32 }
 0x1ba   :  { %1553 = vmatpush3.bf16.msra.mxu1 %v1799_v48 }
 0x1bb   :  { %1554 = vmatprep.subr.bf16.mxu1 %v1840_v32 }
 0x1be   :  { %1555 = vmatpush3.bf16.msra.mxu1 %v1800_v1 }
 0x1bf   :  { %1556 = vmatprep.subr.bf16.mxu1 %v1840_v32 }
 0x1c2   :  { %1557 = vmatpush3.bf16.msra.mxu1 %v1801_v2 }
 0x1c3   :  { %1558 = vmatprep.subr.bf16.mxu1 %v1840_v32 }
 0x1c6   :  { %1559 = vmatpush3.bf16.msra.mxu1 %v1802_v3 }
 0x1c7   :  { %1560 = vmatprep.subr.bf16.mxu1 %v1840_v32 }
 0x1ca   :  { %1561 = vmatpush3.bf16.msra.mxu1 %v1803_v4 }
 0x1cb   :  { %1562 = vmatprep.subr.bf16.mxu1 %v1840_v32 }
 0x1ce   :  { %1563 = vmatpush3.bf16.msra.mxu1 %v1804_v5 }
 0x284   :  { %v1533_v6 = vpop.f32.mrb[4].mxu1 }
 0x285   :  { %v1534_v8 = vpop.f32.mrb[5].mxu1 }
 0x286   :  { %v1535_v9 = vadd.f32 %v1534_v8, %v1533_v6  ;;  %v1536_v10 = vpop.f32.mrb[6].mxu1 }
 0x287   :  { %v1537_v11 = vpop.f32.mrb[7].mxu1 }
 0x288   :  { %v1217_v12 = vadd.f32 %v1535_v9, %v1491_v7  ;;  %v1538_v13 = vadd.f32 %v1537_v11, %v1536_v10 }
 0x28a   :  { %v1220_v14 = vadd.f32 %v1538_v13, %v1491_v7  ;;  %v1223_v15 = vmax.f32 %v1217_v12, 0.0 }
 0x28c   :  { %v1224_v16 = vmax.f32 %v1220_v14, 0.0 }
 0x28e   :  { %v1225_v17 = vpack.c.bf16 %v1224_v16, %v1223_v15 }
 0x290   :  { %1565 = vmatmul.mubr.bf16.vlgmr.msra.gmra.mrb[8].mxu1 %v1225_v17 }
 0x363   :  { %v1331_v19 = vpop.f32.mrb[8].mxu1 }
 0x364   :  { %v1332_v20 = vadd.f32 %v1508_v18, %v1331_v19  ;;  %v1566_v21 = vpop.f32.mrb[9].mxu1 }
 0x365   :  { %v1334_v22 = vpop.f32.mrb[10].mxu1 }
 0x366   :  { %v1338_v23 = vsub.f32 0.0, %v1332_v20  ;;  %v1335_v24 = vadd.f32 %v1508_v18, %v1334_v22  ;;  %v1567_v25 = vpop.f32.mrb[11].mxu1 }
 0x368   :  { %v1340_v26 = vmul.f32 1.442695, %v1338_v23  ;;  %v1339_v27 = vsub.f32 0.0, %v1335_v24 }
 0x36a   :  { %1805 = vpow2.f32 %v1340_v26  ;;  %v1342_v28 = vmul.f32 1.442695, %v1339_v27 }
 0x36c   :  { %1807 = vpow2.f32 %v1342_v28 }
 0x374   :  { %v1806_v29 = vpop.eup %1805 }
 0x375   :  { %v1344_v30 = vadd.f32 1.0, %v1806_v29 }
 0x376   :  { %v1808_v31 = vpop.eup %1807 }
 0x377   :  { %1809 = vrcp.f32 %v1344_v30  ;;  %v1345_v32 = vadd.f32 1.0, %v1808_v31 }
 0x379   :  { %1811 = vrcp.f32 %v1345_v32 }
 0x381   :  { %v1810_v33 = vpop.eup %1809 }
 0x382   :  { %1348 = vst [vmem:[%s2036_s7] sm:$0xff] %v1810_v33 }
 0x383   :  { %v1812_v34 = vpop.eup %1811 }
 0x384   :  { %1349 = vst [vmem:[%s2036_s7 + $0x8] sm:$0xff] %v1812_v34 }
 0x385   :  { %1354 = vsyncpa [#allocation3], 1 }

</bundles_post_ra>
